<compile_context>
chip_gen: v6e
topology: v6e:2x2x1
jax: 0.10.0
libtpu: 0.0.40
codegen_flags: <defaults>
</compile_context>

<pallas_src>
import jax
import jax.numpy as jnp
from jax.experimental import pallas as pl
from jax.experimental.pallas import tpu as pltpu

F32 = jnp.float32
BF16 = jnp.bfloat16


# ----------------------------- shared math helpers -----------------------------

def _layernorm(x, gamma, beta, eps=1e-5):
    mu = jnp.mean(x, axis=-1, keepdims=True)
    xc = x - mu
    var = jnp.mean(xc * xc, axis=-1, keepdims=True)
    return xc * jax.lax.rsqrt(var + eps) * gamma + beta


def _softmax(x):
    m = jnp.max(x, axis=-1, keepdims=True)
    e = jnp.exp(x - m)
    return e / jnp.sum(e, axis=-1, keepdims=True)


def _gelu(x):
    # TODO(synk): PyTorch nn.GELU() default is erf-exact; tanh approximation used here.
    c = jnp.sqrt(2.0 / jnp.pi).astype(x.dtype)
    return 0.5 * x * (1.0 + jnp.tanh(c * (x + 0.044715 * x * x * x)))


# --------------------------------- kernel A ------------------------------------
# LN1 + fused projections + per-head slice softmax + slice-token reduction over N.

def make_slice_kernel():
    def kernel(x_ref, ln1_g, ln1_b, w_fx, b_fx, w_slc, b_slc, ones_blk,
               sw_ref, cross_ref, snorm_ref):
        n = pl.program_id(1)

        x = x_ref[0]                                               # (TN, C) f32
        y = _layernorm(x, ln1_g[...], ln1_b[...])
        y_bf = y.astype(BF16)

        # Fused input projections: all heads at once, full MXU lane width.
        fx_all = (jnp.dot(y_bf, w_fx[...], preferred_element_type=F32)
                  + b_fx[...])                                     # (TN, H*D)
        logits = (jnp.dot(y_bf, w_slc[...], preferred_element_type=F32)
                  + b_slc[...])                                    # (TN, H*G)

        # Per-head softmax over each G-wide block: subtracting the global row
        # max is exact for every block; per-block denominators come from one
        # block-diagonal-ones matmul (kept in f32 for accuracy).
        m = jnp.max(logits, axis=-1, keepdims=True)
        e = jnp.exp(logits - m)
        denom = jnp.dot(e, ones_blk[...], preferred_element_type=F32)
        sw = e / denom                                             # (TN, H*G)
        sw_ref[0] = sw

        @pl.when(n == 0)
        def _():
            cross_ref[...] = jnp.zeros(cross_ref.shape, cross_ref.dtype)
            snorm_ref[...] = jnp.zeros(snorm_ref.shape, snorm_ref.dtype)

        # Slice-token numerator: one wide (H*G, H*D) cross matmul; per-head
        # (G, D) diagonal blocks are extracted in XLA between the two kernels.
        cross_ref[0] += jnp.einsum('tg,td->gd', sw, fx_all,
                                   preferred_element_type=F32)
        # Slice normalizer: plain column reduction (no ones-matmul).
        snorm_ref[0] += jnp.sum(sw, axis=0, keepdims=True)         # (1, H*G)

    return kernel


# --------------------------------- kernel B ------------------------------------
# Deslice + fused output projection + residual + LN2 + MLP + residual, per N-tile.

def make_mix_kernel():
    def kernel(x_ref, sw_ref, deproj_ref, b_out, ln2_g, ln2_b,
               w_m1, b_m1, w_m2, b_m2, o_ref):
        x = x_ref[0]                                               # (TN, C)
        sw = sw_ref[0]                                             # (TN, H*G)

        # deproj = (slice-token attention output) @ W_out (folded in XLA), so
        # deslice + output projection is ONE wide matmul; bias added once here.
        attn = (jnp.dot(sw.astype(BF16), deproj_ref[0],
                        preferred_element_type=F32) + b_out[...])  # (TN, C)
        fx1 = attn + x                                             # residual 1

        z = _layernorm(fx1, ln2_g[...], ln2_b[...])
        hid = _gelu(jnp.dot(z.astype(BF16), w_m1[...],
                            preferred_element_type=F32) + b_m1[...])
        fx2 = (jnp.dot(hid.astype(BF16), w_m2[...],
                       preferred_element_type=F32) + b_m2[...] + fx1)
        o_ref[0] = fx2

    return kernel


# --------------------------------- host wrapper --------------------------------

def _pick_block_n(N):
    # NOTE: halve the tile on v7x (64 MiB VMEM) for large C; sweep per chip.
    for cand in (256, 128, 64, 32, 16, 8):
        if N % cand == 0:
            return cand
    return N


def transolver_block_pallas(fx, params, *, num_heads, slice_num, mlp_ratio=4,
                            last_layer=False, out_dim=1, block_n=None):
    B, N, C = fx.shape
    H = num_heads
    D = C // H
    G = slice_num
    HG, HD = H * G, H * D

    TN = block_n if block_n is not None else _pick_block_n(N)
    assert N % TN == 0, "N must be divisible by the N-tile size"
    NT = N // TN

    temp = params['temperature']                                   # (H,)

    # Fold in_project_x -> in_project_slice -> /temperature into one (C, H*G)
    # projection (both are Linear layers with no nonlinearity in between).
    w_x_h = params['w_x'].reshape(C, H, D)
    w_slc = (jnp.einsum('chd,dg->chg', w_x_h, params['w_slice'])
             / temp[None, :, None]).reshape(C, HG)
    b_slc = ((jnp.einsum('hd,dg->hg', params['b_x'].reshape(H, D),
                         params['w_slice'])
              + params['b_slice'][None, :]) / temp[:, None]).reshape(1, HG)

    # Block-diagonal ones matrix: per-head softmax denominators via one matmul.
    ones_blk = jnp.kron(jnp.eye(H, dtype=F32), jnp.ones((G, G), F32))  # (HG, HG)

    def const_spec(a):
        return pl.BlockSpec(a.shape, lambda b, n, _nd=a.ndim: (0,) * _nd)
    # TODO(synk): constant-index parameters could drop their second pipeline
    # buffer via pipeline_mode=pl.Buffered(1); left default for compatibility.

    # --------------------------- kernel A: slice pass ---------------------------
    a_args = [
        fx,
        params['ln1_g'].reshape(1, C), params['ln1_b'].reshape(1, C),
        params['w_fx'].astype(BF16), params['b_fx'].reshape(1, HD),
        w_slc.astype(BF16), b_slc,
        ones_blk,
    ]
    sw, cross, snorm = pl.pallas_call(
        make_slice_kernel(),
        grid=(B, NT),
        in_specs=([pl.BlockSpec((1, TN, C), lambda b, n: (b, n, 0))]
                  + [const_spec(a) for a in a_args[1:]]),
        out_specs=[
            pl.BlockSpec((1, TN, HG), lambda b, n: (b, n, 0)),
            pl.BlockSpec((1, HG, HD), lambda b, n: (b, 0, 0)),   # accumulator
            pl.BlockSpec((1, 1, HG), lambda b, n: (b, 0, 0)),    # accumulator
        ],
        out_shape=(
            jax.ShapeDtypeStruct((B, N, HG), F32),
            jax.ShapeDtypeStruct((B, HG, HD), F32),
            jax.ShapeDtypeStruct((B, 1, HG), F32),
        ),
        compiler_params=pltpu.CompilerParams(
            dimension_semantics=("parallel", "arbitrary")),
    )(*a_args)

    # -------- tiny slice-token attention + W_out folding in plain XLA ----------
    tok_num = jnp.einsum('bigjd,ij->bigd',
                         cross.reshape(B, H, G, H, D), jnp.eye(H, dtype=F32))
    snorm3 = snorm.reshape(B, H, G)[..., None]                   # (B, H, G, 1)
    tok = tok_num / (snorm3 + 1e-5)                              # (B, H, G, D)
    q = tok @ params['w_q']
    k = tok @ params['w_k']
    v = tok @ params['w_v']
    a = _softmax(jnp.einsum('bhgd,bhed->bhge', q, k) * (float(D) ** -0.5))
    out_tok = a @ v                                              # (B, H, G, D)
    deproj = jnp.einsum('bhgd,hdc->bhgc', out_tok,
                        params['w_out'].reshape(H, D, C)).reshape(B, HG, C)

    # ------------------ kernel B: deslice + residual + MLP ---------------------
    b_args = [
        fx, sw, deproj.astype(BF16),
        params['b_out'].reshape(1, C),
        params['ln2_g'].reshape(1, C), params['ln2_b'].reshape(1, C),
        params['w_m1'].astype(BF16), params['b_m1'].reshape(1, -1),
        params['w_m2'].astype(BF16), params['b_m2'].reshape(1, C),
    ]
    fx2 = pl.pallas_call(
        make_mix_kernel(),
        grid=(B, NT),
        in_specs=([pl.BlockSpec((1, TN, C), lambda b, n: (b, n, 0)),
                   pl.BlockSpec((1, TN, HG), lambda b, n: (b, n, 0)),
                   pl.BlockSpec((1, HG, C), lambda b, n: (b, 0, 0))]
                  + [const_spec(a) for a in b_args[3:]]),
        out_specs=pl.BlockSpec((1, TN, C), lambda b, n: (b, n, 0)),
        out_shape=jax.ShapeDtypeStruct((B, N, C), F32),
        compiler_params=pltpu.CompilerParams(
            dimension_semantics=("parallel", "parallel")),
    )(*b_args)

    if last_layer:
        # Kept out of the Pallas kernel so its output stays lane-dense
        # (out_dim of 1-2 lanes would force masked partial stores).
        z3 = _layernorm(fx2, params['ln3_g'], params['ln3_b'])
        return z3 @ params['w_fin'] + params['b_fin']
    return fx2


# ------------------------------ pure-JAX reference -------------------------------

def reference(fx, p, H, G, last_layer):
    B, N, C = fx.shape
    D = C // H
    y = _layernorm(fx, p['ln1_g'], p['ln1_b'])
    fx_mid = (y @ p['w_fx'] + p['b_fx']).reshape(B, N, H, D).transpose(0, 2, 1, 3)
    x_mid = (y @ p['w_x'] + p['b_x']).reshape(B, N, H, D).transpose(0, 2, 1, 3)
    logits = (jnp.einsum('bhnd,dg->bhng', x_mid, p['w_slice']) + p['b_slice'])
    logits = logits / p['temperature'][None, :, None, None]
    sw = _softmax(logits)
    snorm = sw.sum(2)
    tok = jnp.einsum('bhnd,bhng->bhgd', fx_mid, sw) / (snorm[..., None] + 1e-5)
    q, k, v = tok @ p['w_q'], tok @ p['w_k'], tok @ p['w_v']
    a = _softmax(jnp.einsum('bhgd,bhed->bhge', q, k) * (D ** -0.5))
    out_x = jnp.einsum('bhgd,bhng->bhnd', a @ v, sw)
    out_x = out_x.transpose(0, 2, 1, 3).reshape(B, N, H * D)
    fx1 = out_x @ p['w_out'] + p['b_out'] + fx
    z = _layernorm(fx1, p['ln2_g'], p['ln2_b'])
    fx2 = _gelu(z @ p['w_m1'] + p['b_m1']) @ p['w_m2'] + p['b_m2'] + fx1
    if last_layer:
        return _layernorm(fx2, p['ln3_g'], p['ln3_b']) @ p['w_fin'] + p['b_fin']
    return fx2


# ---------------------------- deterministic parameters ---------------------------

def init_params(key, C, H, G, mlp_ratio, last_layer, out_dim):
    D = C // H
    ks = jax.random.split(key, 16)

    def w(k, shape, s=0.1):
        return s * jax.random.normal(k, shape, F32)

    p = dict(
        ln1_g=jnp.ones((C,), F32), ln1_b=jnp.zeros((C,), F32),
        w_fx=w(ks[0], (C, H * D)), b_fx=w(ks[1], (H * D,), 0.02),
        w_x=w(ks[2], (C, H * D)), b_x=w(ks[3], (H * D,), 0.02),
        w_slice=w(ks[4], (D, G)), b_slice=w(ks[5], (G,), 0.02),
        temperature=0.5 * jnp.ones((H,), F32),
        w_q=w(ks[6], (D, D)), w_k=w(ks[7], (D, D)), w_v=w(ks[8], (D, D)),
        w_out=w(ks[9], (H * D, C)), b_out=w(ks[10], (C,), 0.02),
        ln2_g=jnp.ones((C,), F32), ln2_b=jnp.zeros((C,), F32),
        w_m1=w(ks[11], (C, mlp_ratio * C)), b_m1=w(ks[12], (mlp_ratio * C,), 0.02),
        w_m2=w(ks[13], (mlp_ratio * C, C)), b_m2=w(ks[14], (C,), 0.02),
    )
    if last_layer:
        kk = jax.random.split(ks[15], 2)
        p.update(ln3_g=jnp.ones((C,), F32), ln3_b=jnp.zeros((C,), F32),
                 w_fin=w(kk[0], (C, out_dim)), b_fin=w(kk[1], (out_dim,), 0.02))
    return p


# --------------------------------------- main ------------------------------------

if __name__ == "__main__":
    key = jax.random.PRNGKey(0)
    B, N, C = 2, 64, 64            # batch, mesh points, hidden_dim
    H, G, mlp_ratio = 4, 32, 4     # num_heads, slice_num, mlp_ratio

    kx, kp = jax.random.split(key)
    fx = jax.random.normal(kx, (B, N, C), F32)

    ok = True
    for last_layer, out_dim in [(False, 1), (True, 2)]:
        params = init_params(kp, C, H, G, mlp_ratio, last_layer, out_dim)
        out = transolver_block_pallas(fx, params, num_heads=H, slice_num=G,
                                      mlp_ratio=mlp_ratio, last_layer=last_layer,
                                      out_dim=out_dim, block_n=32)  # 2 N-tiles
        out = jax.block_until_ready(out)
        ref = reference(fx, params, H, G, last_layer)
        err = float(jnp.max(jnp.abs(out - ref)))
        mag = float(jnp.max(jnp.abs(ref))) + 1e-6
        ok = ok and bool(jnp.all(jnp.isfinite(out))) and (err / mag < 1e-2)

    if ok:
        print("KERNEL_OK")
    else:
        raise SystemExit("Pallas kernel does not match reference")
</pallas_src>

<mosaic_0001>
module attributes {stable_mosaic.version = 11 : i64} {
  func.func @kernel(%arg0: i32, %arg1: i32, %arg2: memref<1x32x64xf32, #tpu.memory_space<vmem>>, %arg3: memref<1x64xf32, #tpu.memory_space<vmem>>, %arg4: memref<1x64xf32, #tpu.memory_space<vmem>>, %arg5: memref<64x64xbf16, #tpu.memory_space<vmem>>, %arg6: memref<1x64xf32, #tpu.memory_space<vmem>>, %arg7: memref<64x128xbf16, #tpu.memory_space<vmem>>, %arg8: memref<1x128xf32, #tpu.memory_space<vmem>>, %arg9: memref<128x128xf32, #tpu.memory_space<vmem>>, %arg10: memref<1x32x128xf32, #tpu.memory_space<vmem>>, %arg11: memref<1x128x64xf32, #tpu.memory_space<vmem>>, %arg12: memref<1x1x128xf32, #tpu.memory_space<vmem>>) attributes {dimension_semantics = [#tpu.dimension_semantics<parallel>, #tpu.dimension_semantics<arbitrary>], iteration_bounds = array<i64: 2, 2>, scalar_prefetch = 0 : i64, scratch_operands = 0 : i64, tpu.core_type = #tpu.core_type<tc>, window_params = [{transform_indices = @transform_0, window_bounds = array<i64: 1, 32, 64>}, {pipeline_mode = #tpu.pipeline_mode<synchronous>, transform_indices = @transform_1, window_bounds = array<i64: 1, 64>}, {pipeline_mode = #tpu.pipeline_mode<synchronous>, transform_indices = @transform_2, window_bounds = array<i64: 1, 64>}, {pipeline_mode = #tpu.pipeline_mode<synchronous>, transform_indices = @transform_3, window_bounds = array<i64: 64, 64>}, {pipeline_mode = #tpu.pipeline_mode<synchronous>, transform_indices = @transform_4, window_bounds = array<i64: 1, 64>}, {pipeline_mode = #tpu.pipeline_mode<synchronous>, transform_indices = @transform_5, window_bounds = array<i64: 64, 128>}, {pipeline_mode = #tpu.pipeline_mode<synchronous>, transform_indices = @transform_6, window_bounds = array<i64: 1, 128>}, {pipeline_mode = #tpu.pipeline_mode<synchronous>, transform_indices = @transform_7, window_bounds = array<i64: 128, 128>}, {transform_indices = @transform_8, window_bounds = array<i64: 1, 32, 128>}, {transform_indices = @transform_9, window_bounds = array<i64: 1, 128, 64>}, {transform_indices = @transform_10, window_bounds = array<i64: 1, 1, 128>}]} {
    %c0 = arith.constant 0 : index
    %c0_0 = arith.constant 0 : index
    %c0_1 = arith.constant 0 : index
    %0 = vector.load %arg2[%c0, %c0_0, %c0_1] : memref<1x32x64xf32, #tpu.memory_space<vmem>>, vector<1x32x64xf32>
    %1 = vector.shape_cast %0 : vector<1x32x64xf32> to vector<32x64xf32>
    %c0_2 = arith.constant 0 : index
    %c0_3 = arith.constant 0 : index
    %2 = vector.load %arg3[%c0_2, %c0_3] : memref<1x64xf32, #tpu.memory_space<vmem>>, vector<1x64xf32>
    %c0_4 = arith.constant 0 : index
    %c0_5 = arith.constant 0 : index
    %3 = vector.load %arg4[%c0_4, %c0_5] : memref<1x64xf32, #tpu.memory_space<vmem>>, vector<1x64xf32>
    %cst = arith.constant dense<0.000000e+00> : vector<32xf32>
    %4 = vector.multi_reduction <add>, %1, %cst [1] : vector<32x64xf32> to vector<32xf32>
    %5 = vector.shape_cast %4 : vector<32xf32> to vector<32x1xf32>
    %cst_6 = arith.constant 6.400000e+01 : f32
    %6 = vector.broadcast %cst_6 : f32 to vector<32x1xf32>
    %7 = arith.divf %5, %6 : vector<32x1xf32>
    %8 = vector.broadcast %7 : vector<32x1xf32> to vector<32x64xf32>
    %9 = arith.subf %1, %8 : vector<32x64xf32>
    %10 = arith.mulf %9, %9 : vector<32x64xf32>
    %cst_7 = arith.constant dense<0.000000e+00> : vector<32xf32>
    %11 = vector.multi_reduction <add>, %10, %cst_7 [1] : vector<32x64xf32> to vector<32xf32>
    %12 = vector.shape_cast %11 : vector<32xf32> to vector<32x1xf32>
    %cst_8 = arith.constant 6.400000e+01 : f32
    %13 = vector.broadcast %cst_8 : f32 to vector<32x1xf32>
    %14 = arith.divf %12, %13 : vector<32x1xf32>
    %cst_9 = arith.constant 9.99999974E-6 : f32
    %15 = vector.broadcast %cst_9 : f32 to vector<32x1xf32>
    %16 = arith.addf %14, %15 : vector<32x1xf32>
    %17 = math.rsqrt %16 : vector<32x1xf32>
    %18 = vector.broadcast %17 : vector<32x1xf32> to vector<32x64xf32>
    %19 = arith.mulf %9, %18 : vector<32x64xf32>
    %20 = vector.broadcast %2 : vector<1x64xf32> to vector<32x64xf32>
    %21 = arith.mulf %19, %20 : vector<32x64xf32>
    %22 = vector.broadcast %3 : vector<1x64xf32> to vector<32x64xf32>
    %23 = arith.addf %21, %22 : vector<32x64xf32>
    %24 = arith.truncf %23 : vector<32x64xf32> to vector<32x64xbf16>
    %c0_10 = arith.constant 0 : index
    %c0_11 = arith.constant 0 : index
    %25 = vector.load %arg5[%c0_10, %c0_11] : memref<64x64xbf16, #tpu.memory_space<vmem>>, vector<64x64xbf16>
    %cst_12 = arith.constant dense<0.000000e+00> : vector<32x64xf32>
    %26 = tpu.matmul %24, %25, %cst_12 {dimension_numbers = #tpu.dot_dimension_numbers<[1], [0], [0], [1], [0, 0, 1, 1], [], []>} : vector<32x64xbf16>, vector<64x64xbf16>, vector<32x64xf32> -> vector<32x64xf32>
    %c0_13 = arith.constant 0 : index
    %c0_14 = arith.constant 0 : index
    %27 = vector.load %arg6[%c0_13, %c0_14] : memref<1x64xf32, #tpu.memory_space<vmem>>, vector<1x64xf32>
    %28 = vector.broadcast %27 : vector<1x64xf32> to vector<32x64xf32>
    %29 = arith.addf %26, %28 : vector<32x64xf32>
    %c0_15 = arith.constant 0 : index
    %c0_16 = arith.constant 0 : index
    %30 = vector.load %arg7[%c0_15, %c0_16] : memref<64x128xbf16, #tpu.memory_space<vmem>>, vector<64x128xbf16>
    %cst_17 = arith.constant dense<0.000000e+00> : vector<32x128xf32>
    %31 = tpu.matmul %24, %30, %cst_17 {dimension_numbers = #tpu.dot_dimension_numbers<[1], [0], [0], [1], [0, 0, 1, 1], [], []>} : vector<32x64xbf16>, vector<64x128xbf16>, vector<32x128xf32> -> vector<32x128xf32>
    %c0_18 = arith.constant 0 : index
    %c0_19 = arith.constant 0 : index
    %32 = vector.load %arg8[%c0_18, %c0_19] : memref<1x128xf32, #tpu.memory_space<vmem>>, vector<1x128xf32>
    %33 = vector.broadcast %32 : vector<1x128xf32> to vector<32x128xf32>
    %34 = arith.addf %31, %33 : vector<32x128xf32>
    %cst_20 = arith.constant dense<0xFF800000> : vector<32xf32>
    %35 = vector.multi_reduction <maximumf>, %34, %cst_20 [1] : vector<32x128xf32> to vector<32xf32>
    %36 = vector.shape_cast %35 : vector<32xf32> to vector<32x1xf32>
    %37 = vector.broadcast %36 : vector<32x1xf32> to vector<32x128xf32>
    %38 = arith.subf %34, %37 : vector<32x128xf32>
    %39 = math.exp %38 : vector<32x128xf32>
    %c0_21 = arith.constant 0 : index
    %c0_22 = arith.constant 0 : index
    %40 = vector.load %arg9[%c0_21, %c0_22] : memref<128x128xf32, #tpu.memory_space<vmem>>, vector<128x128xf32>
    %cst_23 = arith.constant dense<0.000000e+00> : vector<32x128xf32>
    %41 = tpu.matmul %39, %40, %cst_23 {dimension_numbers = #tpu.dot_dimension_numbers<[1], [0], [0], [1], [0, 0, 1, 1], [], []>} : vector<32x128xf32>, vector<128x128xf32>, vector<32x128xf32> -> vector<32x128xf32>
    %42 = arith.divf %39, %41 : vector<32x128xf32>
    %c0_24 = arith.constant 0 : index
    %c0_25 = arith.constant 0 : index
    %c0_26 = arith.constant 0 : index
    %43 = vector.load %arg10[%c0_24, %c0_25, %c0_26] : memref<1x32x128xf32, #tpu.memory_space<vmem>>, vector<1x32x128xf32>
    %44 = vector.shape_cast %43 : vector<1x32x128xf32> to vector<32x128xf32>
    %45 = vector.shape_cast %42 : vector<32x128xf32> to vector<1x32x128xf32>
    tpu.vector_store %arg10[%c0_24, %c0_25, %c0_26], %45 {strides = array<i32>} : memref<1x32x128xf32, #tpu.memory_space<vmem>>, vector<1x32x128xf32>,
    %c0_i32 = arith.constant 0 : i32
    %46 = arith.cmpi eq, %arg1, %c0_i32 : i32
    %47 = arith.extui %46 : i1 to i32
    %c0_i32_27 = arith.constant 0 : i32
    %48 = arith.cmpi ne, %47, %c0_i32_27 : i32
    scf.if %48 {
      %cst_42 = arith.constant 0.000000e+00 : f32
      %64 = vector.broadcast %cst_42 : f32 to vector<1x128x64xf32>
      %c0_43 = arith.constant 0 : index
      %c0_44 = arith.constant 0 : index
      %c0_45 = arith.constant 0 : index
      %65 = vector.load %arg11[%c0_43, %c0_44, %c0_45] : memref<1x128x64xf32, #tpu.memory_space<vmem>>, vector<1x128x64xf32>
      tpu.vector_store %arg11[%c0_43, %c0_44, %c0_45], %64 {strides = array<i32>} : memref<1x128x64xf32, #tpu.memory_space<vmem>>, vector<1x128x64xf32>,
      %cst_46 = arith.constant 0.000000e+00 : f32
      %66 = vector.broadcast %cst_46 : f32 to vector<1x1x128xf32>
      %c0_47 = arith.constant 0 : index
      %c0_48 = arith.constant 0 : index
      %c0_49 = arith.constant 0 : index
      %67 = vector.load %arg12[%c0_47, %c0_48, %c0_49] : memref<1x1x128xf32, #tpu.memory_space<vmem>>, vector<1x1x128xf32>
      tpu.vector_store %arg12[%c0_47, %c0_48, %c0_49], %66 {strides = array<i32>} : memref<1x1x128xf32, #tpu.memory_space<vmem>>, vector<1x1x128xf32>,
    } else {
    }
    %c0_28 = arith.constant 0 : index
    %c0_29 = arith.constant 0 : index
    %c0_30 = arith.constant 0 : index
    %49 = vector.load %arg11[%c0_28, %c0_29, %c0_30] : memref<1x128x64xf32, #tpu.memory_space<vmem>>, vector<1x128x64xf32>
    %50 = vector.shape_cast %49 : vector<1x128x64xf32> to vector<128x64xf32>
    "tpu.trace_start"() <{level = 10 : i32, message = "tg,td->gd"}> : () -> ()
    %cst_31 = arith.constant dense<0.000000e+00> : vector<128x64xf32>
    %51 = tpu.matmul %42, %29, %cst_31 {dimension_numbers = #tpu.dot_dimension_numbers<[0], [0], [1], [1], [0, 1, 1, 1], [], []>} : vector<32x128xf32>, vector<32x64xf32>, vector<128x64xf32> -> vector<128x64xf32>
    "tpu.trace_stop"() : () -> ()
    %52 = arith.addf %50, %51 : vector<128x64xf32>
    %c0_32 = arith.constant 0 : index
    %c0_33 = arith.constant 0 : index
    %c0_34 = arith.constant 0 : index
    %53 = vector.load %arg11[%c0_32, %c0_33, %c0_34] : memref<1x128x64xf32, #tpu.memory_space<vmem>>, vector<1x128x64xf32>
    %54 = vector.shape_cast %53 : vector<1x128x64xf32> to vector<128x64xf32>
    %55 = vector.shape_cast %52 : vector<128x64xf32> to vector<1x128x64xf32>
    tpu.vector_store %arg11[%c0_32, %c0_33, %c0_34], %55 {strides = array<i32>} : memref<1x128x64xf32, #tpu.memory_space<vmem>>, vector<1x128x64xf32>,
    %c0_35 = arith.constant 0 : index
    %c0_36 = arith.constant 0 : index
    %c0_37 = arith.constant 0 : index
    %56 = vector.load %arg12[%c0_35, %c0_36, %c0_37] : memref<1x1x128xf32, #tpu.memory_space<vmem>>, vector<1x1x128xf32>
    %57 = vector.shape_cast %56 : vector<1x1x128xf32> to vector<1x128xf32>
    %cst_38 = arith.constant dense<0.000000e+00> : vector<128xf32>
    %58 = vector.multi_reduction <add>, %42, %cst_38 [0] : vector<32x128xf32> to vector<128xf32>
    %59 = vector.shape_cast %58 : vector<128xf32> to vector<1x128xf32>
    %60 = arith.addf %57, %59 : vector<1x128xf32>
    %c0_39 = arith.constant 0 : index
    %c0_40 = arith.constant 0 : index
    %c0_41 = arith.constant 0 : index
    %61 = vector.load %arg12[%c0_39, %c0_40, %c0_41] : memref<1x1x128xf32, #tpu.memory_space<vmem>>, vector<1x1x128xf32>
    %62 = vector.shape_cast %61 : vector<1x1x128xf32> to vector<1x128xf32>
    %63 = vector.shape_cast %60 : vector<1x128xf32> to vector<1x1x128xf32>
    tpu.vector_store %arg12[%c0_39, %c0_40, %c0_41], %63 {strides = array<i32>} : memref<1x1x128xf32, #tpu.memory_space<vmem>>, vector<1x1x128xf32>,
    return
  }
  func.func @transform_0(%arg0: i32, %arg1: i32) -> (i32, i32, i32) {
    %c0_i32 = arith.constant 0 : i32
    %c0_i32_0 = arith.constant 0 : i32
    return %arg0, %arg1, %c0_i32 : i32, i32, i32
  }
  func.func @transform_1(%arg0: i32, %arg1: i32) -> (i32, i32) {
    %c0_i32 = arith.constant 0 : i32
    %c0_i32_0 = arith.constant 0 : i32
    %c0_i32_1 = arith.constant 0 : i32
    return %c0_i32, %c0_i32_0 : i32, i32
  }
  func.func @transform_2(%arg0: i32, %arg1: i32) -> (i32, i32) {
    %c0_i32 = arith.constant 0 : i32
    %c0_i32_0 = arith.constant 0 : i32
    %c0_i32_1 = arith.constant 0 : i32
    return %c0_i32, %c0_i32_0 : i32, i32
  }
  func.func @transform_3(%arg0: i32, %arg1: i32) -> (i32, i32) {
    %c0_i32 = arith.constant 0 : i32
    %c0_i32_0 = arith.constant 0 : i32
    %c0_i32_1 = arith.constant 0 : i32
    return %c0_i32, %c0_i32_0 : i32, i32
  }
  func.func @transform_4(%arg0: i32, %arg1: i32) -> (i32, i32) {
    %c0_i32 = arith.constant 0 : i32
    %c0_i32_0 = arith.constant 0 : i32
    %c0_i32_1 = arith.constant 0 : i32
    return %c0_i32, %c0_i32_0 : i32, i32
  }
  func.func @transform_5(%arg0: i32, %arg1: i32) -> (i32, i32) {
    %c0_i32 = arith.constant 0 : i32
    %c0_i32_0 = arith.constant 0 : i32
    %c0_i32_1 = arith.constant 0 : i32
    return %c0_i32, %c0_i32_0 : i32, i32
  }
  func.func @transform_6(%arg0: i32, %arg1: i32) -> (i32, i32) {
    %c0_i32 = arith.constant 0 : i32
    %c0_i32_0 = arith.constant 0 : i32
    %c0_i32_1 = arith.constant 0 : i32
    return %c0_i32, %c0_i32_0 : i32, i32
  }
  func.func @transform_7(%arg0: i32, %arg1: i32) -> (i32, i32) {
    %c0_i32 = arith.constant 0 : i32
    %c0_i32_0 = arith.constant 0 : i32
    %c0_i32_1 = arith.constant 0 : i32
    return %c0_i32, %c0_i32_0 : i32, i32
  }
  func.func @transform_8(%arg0: i32, %arg1: i32) -> (i32, i32, i32) {
    %c0_i32 = arith.constant 0 : i32
    %c0_i32_0 = arith.constant 0 : i32
    return %arg0, %arg1, %c0_i32 : i32, i32, i32
  }
  func.func @transform_9(%arg0: i32, %arg1: i32) -> (i32, i32, i32) {
    %c0_i32 = arith.constant 0 : i32
    %c0_i32_0 = arith.constant 0 : i32
    %c0_i32_1 = arith.constant 0 : i32
    return %arg0, %c0_i32, %c0_i32_0 : i32, i32, i32
  }
  func.func @transform_10(%arg0: i32, %arg1: i32) -> (i32, i32, i32) {
    %c0_i32 = arith.constant 0 : i32
    %c0_i32_0 = arith.constant 0 : i32
    %c0_i32_1 = arith.constant 0 : i32
    return %arg0, %c0_i32, %c0_i32_0 : i32, i32, i32
  }
}

</mosaic_0001>

<bundles_post_ra>
// kernel: tpu_custom_call.1
= control target key start
LH: loop header
LB: loop body
LE: loop exit
PB: predicated region body
PF: predicated region fallthrough
CT: control target
= control target key end

     0   :  { %s2598_s0 = inlined_call_operand.hbm [shape: f32[2,64,64], index: 0, kind: input, shape index: {}]   ;;  %s2599_s1 = inlined_call_operand.vmem [shape: f32[1,64], index: 1, kind: input, shape index: {}]   ;;  %s2600_s2 = inlined_call_operand.vmem [shape: f32[1,64], index: 2, kind: input, shape index: {}]   ;;  %s2601_s3 = inlined_call_operand.hbm [shape: bf16[64,64], index: 3, kind: input, shape index: {}]   ;;  %s2602_s4 = inlined_call_operand.vmem [shape: f32[1,64], index: 4, kind: input, shape index: {}]   ;;  %s2603_s5 = inlined_call_operand.hbm [shape: bf16[64,128], index: 5, kind: input, shape index: {}]   ;;  %s2604_s6 = inlined_call_operand.vmem [shape: f32[1,128], index: 6, kind: input, shape index: {}]   ;;  %s2605_s7 = inlined_call_operand.hbm [shape: f32[128,128], index: 7, kind: input, shape index: {}]   ;;  %s2606_s8 = inlined_call_operand.hbm [shape: f32[2,64,128], index: 8, kind: output, shape index: {0}]   ;;  %s2607_s9 = inlined_call_operand.vmem [shape: f32[2,128,64], index: 9, kind: output, shape index: {1}]   ;;  %s2608_s10 = inlined_call_operand.hbm [shape: f32[2,1,128], index: 10, kind: output, shape index: {2}]  }
   0x1   :  { %2628 = sst [smem:[#allocation27_spill]] %s2598_s0 }
   0x2   :  { %2629 = sst [smem:[#allocation28_spill]] %s2599_s1 }
   0x3   :  { %2630 = sst [smem:[#allocation29_spill]] %s2600_s2 }
   0x4   :  { %2631 = sst [smem:[#allocation30_spill]] %s2601_s3 }
   0x5   :  { %2632 = sst [smem:[#allocation31_spill]] %s2602_s4 }
   0x6   :  { %2633 = sst [smem:[#allocation32_spill]] %s2603_s5 }
   0x7   :  { %2634 = sst [smem:[#allocation33_spill]] %s2604_s6 }
   0x8   :  { %2635 = sst [smem:[#allocation34_spill]] %s2605_s7 }
   0x9   :  { %2636 = sst [smem:[#allocation35_spill]] %s2606_s8 }
   0xa   :  { %2637 = sst [smem:[#allocation36_spill]] %s2607_s9 }
   0xb   :  { %2638 = sst [smem:[#allocation37_spill]] %s2608_s10 }
   0xc   :  { %16 = vsyncpa [#allocation3], 0 }
   0xd   :  { %18 = vsyncpa [#allocation3 + $0x1], 0 }
   0xe   :  { %19 = vsyncpa [#allocation6], 0 }
   0xf   :  { %20 = vsyncpa [#allocation9], 0 }
  0x10   :  { %21 = vsyncpa [#allocation4], 0 }
  0x11   :  { %23 = vsyncpa [#allocation4 + $0x1], 0 }
  0x12   :  { %24 = vsyncpa [#allocation12], 0 }
  0x13   :  { %26 = vsyncpa [#allocation12 + $0x1], 0  ;;  %s2100_s13 = smov 0   ;;  %s2102_s14 = smov 0  }
  0x14   :  { %s2104_s15 = smov 0   ;;  %s2106_s16 = smov 0  }
  0x15   :  { %s2108_s17 = smov 0   ;;  %s2110_s18 = smov 0  }
  0x16   :  { %s2112_s19 = smov 0   ;;  %s2114_s20 = smov 0  }
  0x17   :  { %s2116_s21 = smov 0   ;;  %s2118_s22 = smov 0  }
  0x18   :  { %s2120_s23 = smov 0  }
  0x19 LB: > { %2639 = sst [smem:[#allocation18_spill]] %s1990_s13  ;;  %s1382_s24 = sadd.s32 4294967295, %s2030_s23   ;;  %s2030_s23 = sphi %s2120_s23, %s32_s23   ;;  %s2026_s22 = sphi %s2118_s22, %s2697_s22   ;;  %s2022_s21 = sphi %s2116_s21, %s2696_s21   ;;  %s2018_s20 = sphi %s2114_s20, %s2695_s20   ;;  %s2014_s19 = sphi %s2112_s19, %s2694_s19   ;;  %s2010_s18 = sphi %s2110_s18, %s2693_s18   ;;  %s2006_s17 = sphi %s2108_s17, %s2692_s17   ;;  %s2002_s16 = sphi %s2106_s16, %s2691_s16   ;;  %s1998_s15 = sphi %s2104_s15, %s2690_s15   ;;  %s1994_s14 = sphi %s2102_s14, %s2689_s14   ;;  %s1990_s13 = sphi %s2100_s13, %s2688_s13  }
  0x1a   : > { %2640 = sst [smem:[#allocation19_spill]] %s2002_s16  ;;  %s1383_s25 = sadd.s32 4294967294, %s2030_s23  }
  0x1b   : > { %2641 = sst [smem:[#allocation20_spill]] %s2014_s19  ;;  %p66_p0 = scmp.ne.s32.totalorder %s2006_s17, %s2002_s16 }
  0x1c   : > { %p2159_p1 = scmp.eq.s32.totalorder %s1382_s24, 0  ;;  %p2163_p2 = scmp.eq.s32.totalorder %s1382_s24, 3 }
  0x1d   : > { %p245_p3 = scmp.eq.s32.totalorder %s1383_s25, 3  ;;  %p290_p6 = scmp.ne.s32.totalorder %s1998_s15, %s1994_s14 }
  0x1e   : > { %s2642_s26 = scalar_select %p2159_p1, 1, 0 }
  0x1f   : > { %p2169_p4 = por %p2159_p1, %p66_p0  ;;  %p2174_p5 = por %p245_p3, %p66_p0 }
  0x20   : > { %p296_p7 = scmp.ne.s32.totalorder %s1994_s14, %s1990_s13  ;;  %p1384_p8 = scmp.ge.s32.totalorder %s2030_s23, 1 }
  0x21   : > { %s2644_s28 = scalar_select %p2169_p4, 1, 0 }
  0x22   : > { %s2645_s30 = scalar_select %p2174_p5, 1, 0 }
  0x23   : > { %p2185_p9 = por %p290_p6, %p2163_p2  ;;  %p304_p10 = scmp.lt.s32.totalorder %s2030_s23, 5 }
  0x24   : > { %2646 = sst [smem:[#allocation21_spill]] %s2645_s30  ;;  %p2190_p11 = por %p296_p7, %p245_p3 }
  0x25   : > { %s2647_s11 = scalar_select %p2185_p9, 1, 0 }
  0x26   : > { %s2649_s12 = scalar_select %p2190_p11, 1, 0 }
  0x27   : > { %2648 = sst [smem:[#allocation22_spill]] %s2647_s11  ;;  %p2194_p12 = pnand %p1384_p8, %p304_p10 }
  0x28   : > { %2650 = sst [smem:[#allocation23_spill]] %s2649_s12  ;;  %s2032_s25 = smov [#allocation5]  }
  0x29   : > { %s322_s29 = sshll.u32 %s2032_s25, 4  ;;  %p1606_p13 = pneg %p2194_p12  ;;  %s323_s29 = int_to_ptr.vmem [resolvable:$true] %s322_s29 }
  0x2a   : > { %s2033_s30 = smov [#allocation7]   ;;  %s1777_s12 = scalar_lea.vmem %s323_s29, 512 }
  0x2b   : > { %p2202_p0 = pnand %p1606_p13, %p2159_p1  ;;  %s338_s16 = sshll.u32 %s2033_s30, 4  ;;  %s339_s16 = int_to_ptr.vmem [resolvable:$true] %s338_s16 }
  0x2c   : > { %p1778_p6 = scmp.ne.s32.totalorder %s323_s29, %s1777_s12  ;;  %p1785_p10 = scmp.lt.s32.totalorder %s323_s29, %s323_s29 }
  0x2d   : > { %p1768_p3 = pneg %p2202_p0  ;;  %p1786_p11 = scmp.lt.s32.totalorder %s1777_s12, %s1777_s12 }
  0x2f   : > { %p1780_p7 = pnand %p1778_p6, %p1768_p3  ;;  %p1787_p5 = por %p1786_p11, %p1785_p10 }
  0x31   : > { %p1781_p8 = pneg %p1780_p7 }
  0x33   : > { %p1788_p13 = pnand %p1787_p5, %p1781_p8 }
  0x35   : > { %1791 = shalt.err (!%p1788_p13)
}
  0x36   : > { %s2034_s25 = smov 64   ;;  %s2035_s10 = smov 4  }
  0x37   : > { %s2653_s3 = sld [smem:[#allocation30_spill]]  ;;  %s1803_s8 = scalar_lea.vmem %s339_s16, 512 }
  0x38   : > { %p1804_p9 = scmp.ne.s32.totalorder %s339_s16, %s1803_s8  ;;  %p1811_p1 = scmp.lt.s32.totalorder %s339_s16, %s339_s16 }
  0x39   : > { %p1812_p4 = scmp.lt.s32.totalorder %s1803_s8, %s1803_s8 }
  0x3a   : > { %p1806_p6 = pnand %p1804_p9, %p1768_p3 }
  0x3b   : > { %p1813_p11 = por %p1812_p4, %p1811_p1 }
  0x3c   : > { %p1807_p7 = pneg %p1806_p6 }
  0x3d   : > { %1609 = dma.hbm_to_vmem [thread:$0]  (!%p2202_p0), %s2653_s3, 512, %s323_s29, [#allocation6], %s2034_s25, %s2034_s25, %s2035_s10  }
  0x3e   : > { %p1814_p5 = pnand %p1813_p11, %p1807_p7 }
  0x40   : > { %1817 = shalt.err (!%p1814_p5)
}
  0x41   : > { %s2654_s5 = sld [smem:[#allocation32_spill]]  ;;  %s2036_s11 = smov [#allocation8]  }
  0x42   : > { %s354_s29 = sshll.u32 %s2036_s11, 4  ;;  %s355_s29 = int_to_ptr.vmem [resolvable:$true] %s354_s29 }
  0x43   : > { %s1829_s30 = scalar_lea.vmem %s355_s29, 2048  ;;  %p1837_p13 = scmp.lt.s32.totalorder %s355_s29, %s355_s29 }
  0x44   : > { %p1830_p8 = scmp.ne.s32.totalorder %s355_s29, %s1829_s30  ;;  %p1838_p1 = scmp.lt.s32.totalorder %s1829_s30, %s1829_s30 }
  0x46   : > { %p1832_p9 = pnand %p1830_p8, %p1768_p3  ;;  %p1839_p4 = por %p1838_p1, %p1837_p13 }
  0x47   : > { %1612 = dma.hbm_to_vmem [thread:$0]  (!%p2202_p0), %s2654_s5, 512, %s339_s16, [#allocation6], %s2034_s25, %s2034_s25, %s2035_s10  }
  0x48   : > { %p1833_p10 = pneg %p1832_p9 }
  0x4a   : > { %p1840_p6 = pnand %p1839_p4, %p1833_p10 }
  0x4c   : > { %1843 = shalt.err (!%p1840_p6)
}
  0x4d   : > { %s2621_s8 = smov 128   ;;  %s2622_s10 = smov 8  }
  0x4e   : > { %s2655_s7 = sld [smem:[#allocation34_spill]]  ;;  %s41_s25 = sadd.s32 1, %s2022_s21 }
  0x4f   : > { %s44_s12 = sadd.s32 1, %s2026_s22  ;;  %p42_p3 = scmp.ge.s32.totalorder %s41_s25, 2 }
  0x50   : > { %s53_s11 = sadd.s32 1, %s2010_s18  ;;  %p60_p7 = scmp.ne.s32.totalorder %s2010_s18, %s2006_s17 }
  0x51   : > { %p61_p11 = scmp.eq.s32.totalorder %s2030_s23, 0  ;;  %s2699_s25 = smov (%p42_p3, %s41_s25), 0 }
  0x52   : > { %2656 = sst [smem:[#allocation24_spill]] %s2699_s25  ;;  %s2701_s12 = smov (!%p42_p3, %s44_s12), %s2026_s22 }
  0x53   : > { %s49_s13 = ssub.s32 %s2022_s21, %s2699_s25  ;;  %p2246_p5 = por %p61_p11, %p60_p7 }
  0x54   : > { %1615 = dma.hbm_to_vmem [thread:$0]  (!%p2202_p0), %s2655_s7, 2048, %s355_s29, [#allocation9], %s2621_s8, %s2621_s8, %s2622_s10  }
  0x55   : > { %p46_p0 = scmp.ge.s32.totalorder %s2701_s12, 2  ;;  %p2252_p8 = por %p2163_p2, %p60_p7 }
  0x56   : > { %p1630_p9 = scmp.lt.s32.totalorder %s2030_s23, 4  ;;  %s368_s16 = sand.u32 1, %s2010_s18  }
  0x57   : > { %s2658_s29 = scalar_select %p2252_p8, 1, 0 }
  0x58   : > { %s2703_s12 = smov (%p46_p0, %s2701_s12), 0  ;;  %s1389_s19 = sshll.u32 %s368_s16, 5 }
  0x59   : > { %2659 = sst [smem:[#allocation25_spill]] %s2658_s29  ;;  %s48_s8 = ssub.s32 %s2026_s22, %s2703_s12 }
  0x5a   : > { %2660 = sst [smem:[#allocation26_spill]] %s2703_s12  ;;  %s50_s10 = sor.u32 %s49_s13, %s48_s8 }
  0x5b   : > { %p278_p10 = scmp.eq.s32.totalorder %s48_s8, 0  ;;  %p51_p13 = scmp.eq.s32.totalorder %s50_s10, 0 }
  0x5c   : > { %s1390_s3 = sshll.u32 %s2022_s21, 2  ;;  %s2661_s5 = sadd.s32 1, %s1998_s15 }
  0x5d   : > { %s2266_s7 = scalar_select %p278_p10, %s1998_s15, %s2661_s5  }
  0x5e   : > { %s2269_s27 = scalar_select %p51_p13, %s2010_s18, %s53_s11  }
  0x5f   : > { %s1391_s25 = sshll.u32 %s2026_s22, 3  ;;  %s372_s29 = scalar_lea.vmem [#allocation2], %s1389_s19 }
  0x60   : > { %s381_s6 = sshll.u32 %s372_s29, 4  ;;  %s378_s4 = sadd.s32 %s1391_s25, %s1390_s3  ;;  %s382_s6 = int_to_ptr.vmem [resolvable:$true] %s381_s6 }
  0x61   : > { %s1392_s2 = sshll.u32 %s378_s4, 7  ;;  %p2276_p2 = pnand %p1630_p9, %p2246_p5 }
  0x62   : > { %s2663_s0 = sld [smem:[#allocation27_spill]]  ;;  %s369_s13 = scalar_lea.sflag [#allocation3], %s368_s16 }
  0x63   : > { %p1846_p1 = pneg %p2276_p2  ;;  %s1857_s11 = scalar_lea.vmem %s382_s6, 512 }
  0x64   : > { %p1858_p4 = scmp.ne.s32.totalorder %s382_s6, %s1857_s11  ;;  %s2039_s3 = smov [#allocation2]  }
  0x65   : > { %s1862_s4 = sshll.u32 %s2039_s3, 4  ;;  %s1863_s4 = int_to_ptr.vmem [resolvable:$false] %s1862_s4 }
  0x66   : > { %p1860_p6 = pnand %p1858_p4, %p1846_p1  ;;  %s1864_s25 = scalar_lea.vmem %s1863_s4, 1024 }
  0x67   : > { %p1865_p7 = scmp.lt.s32.totalorder %s382_s6, %s1863_s4  ;;  %p1866_p11 = scmp.lt.s32.totalorder %s1864_s25, %s1857_s11 }
  0x68   : > { %s380_s5 = scalar_lea.hbm %s2663_s0, %s1392_s2  ;;  %p1861_p3 = pneg %p1860_p6 }
  0x69   : > { %p1867_p5 = por %p1866_p11, %p1865_p7 }
  0x6b   : > { %p1868_p0 = pnand %p1867_p5, %p1861_p3 }
  0x6d   : > { %1871 = shalt.err (!%p1868_p0)
}
  0x6e   : > { %s2664_s30 = smov 8   ;;  %s2665_s2 = smov 128  }
  0x6f   : > { %1619 = dma.hbm_to_vmem [thread:$0]  (!%p2276_p2), %s380_s5, 512, %s382_s6, %s369_s13, %s2665_s2, %s2665_s2, %s2664_s30  }
  0x70   : > { %393 = sbr.rel (%p2194_p12) target bundleno = 1408 (0x580), region = 52  ;;  %s2293_s29 = sand.u32 (!%p2194_p12), 1, %s2006_s17  }
  0x71   : > { %s1394_s16 = sshll.u32 (!%p2194_p12), %s2293_s29, 5  ;;  %s396_s19 = scalar_lea.sflag (!%p2194_p12), [#allocation3], %s2293_s29 }
  0x72   : > { %s399_s8 = scalar_lea.vmem (!%p2194_p12), [#allocation2], %s1394_s16  ;;  %p2666_p9 = scmp.ne.s32.totalorder (!%p2194_p12), %s2644_s28, 0 }
  0x75   : > { %1969 = dma.done.wait (%p2666_p9), %s396_s19, 512  }
  0x76   : > { %1971 = vsyncadd (%p2666_p9), %s396_s19, 4294966784  ;;  %p2667_p10 = scmp.ne.s32.totalorder %s2642_s26, 0 }
  0x78   : > { %1973 = dma.done.wait (%p2667_p10), [#allocation6], 1024  }
  0x79   : > { %1975 = vsyncadd (%p2667_p10), [#allocation6], 4294966272 }
  0x7a   : > { %1977 = dma.done.wait (%p2667_p10), [#allocation9], 2048  }
  0x7b   : > { %1979 = vsyncadd (%p2667_p10), [#allocation9], 4294965248  ;;  %vm471_vm0 = vcmask 523264   ;;  %v465_v0 = vld [vmem:[%s399_s8] sm:$0xff]  ;;  %v467_v1 = vld [vmem:[%s399_s8 + $0x10] sm:$0xff]  ;;  %s455_s1 = sand.u32 1, %s1994_s14  }
  0x7c   : > { %v466_v2 = vld [vmem:[%s399_s8 + $0x8] sm:$0xff]  ;;  %v472_v3 = vsel %vm471_vm0, %v465_v0, 0.0  ;;  %v478_v4 = vsel %vm471_vm0, %v467_v1, 0.0  ;;  %v468_v5 = vld [vmem:[%s399_s8 + $0x18] sm:$0xff]  ;;  %p459_p12 = scmp.lt.s32.totalorder %s2018_s20, 1  ;;  %v1736_v30 = vld [vmem:[#allocation5 + $0x10] sm:$0xff]  }
  0x7d   : > { %473 = vadd.xlane.f32.xlu0 %v472_v3  ;;  %479 = vadd.xlane.f32.xlu1 %v478_v4  ;;  %v475_v6 = vsel %vm471_vm0, %v466_v2, 0.0  ;;  %v481_v7 = vsel %vm471_vm0, %v468_v5, 0.0  ;;  %v1734_v28 = vld [vmem:[#allocation5 + $0x18] sm:$0xff]   ;;  %v1737_v31 = vld [vmem:[#allocation7 + $0x10] sm:$0xff]   ;;  %v1738_v32 = vld [vmem:[#allocation5 + $0x8] sm:$0xff]   ;;  %s2668_s9 = sld [smem:[#allocation36_spill]] }
  0x7e   : > { %v1735_v29 = vld [vmem:[#allocation7 + $0x18] sm:$0xff]   ;;  %s460_s6 = scalar_select %p459_p12, %s2018_s20, 1  ;;  %1494 = vmatprep.subr.bf16.mxu0 %v1734_v28  ;;  %v1739_v33 = vld [vmem:[#allocation7 + $0x8] sm:$0xff]   ;;  %v1740_v34 = vld [vmem:[#allocation5] sm:$0xff]  }
  0x7f   : > { %1506 = vmatprep.subr.bf16.mxu1 %v1735_v29  ;;  %1495 = vmatpush3.bf16.msra.mxu0 %v1734_v28  ;;  %v1741_v35 = vld [vmem:[#allocation7] sm:$0xff]   ;;  %s2669_s11 = sld [smem:[#allocation28_spill]]  ;;  %v764_v4 = vld [vmem:[#allocation8 + $0x78] sm:$0xff]  ;;  %v758_v28 = vld [vmem:[#allocation8 + $0x48] sm:$0xff]  ;;  %s2370_s28 = scalar_lea.vmem [#allocation10], %s1394_s16 }
  0x80   : > { %1507 = vmatpush3.bf16.msra.mxu1 %v1735_v29  ;;  %s1441_s26 = sshll.u32 %s460_s6, 7  ;;  %1496 = vmatprep.subr.bf16.mxu0 %v1736_v30  ;;  %s2670_s25 = sld [smem:[#allocation29_spill]]  ;;  %v757_v29 = vld [vmem:[#allocation8 + $0x40] sm:$0xff] }
  0x81   : > { %476 = vadd.xlane.f32.xlu0 %v475_v6  ;;  %482 = vadd.xlane.f32.xlu1 %v481_v7  ;;  %v762_v6 = vld [vmem:[#allocation8 + $0x68] sm:$0xff]  ;;  %v761_v7 = vld [vmem:[#allocation8 + $0x60] sm:$0xff]  ;;  %s2671_s19 = sld [smem:[#allocation31_spill]]  ;;  %s2388_s16 = scalar_lea.vmem [#allocation11], %s455_s1 }
  0x82   : > { %1508 = vmatprep.subr.bf16.mxu1 %v1737_v31  ;;  %s2673_s24 = sld [smem:[#allocation20_spill]] }
  0x83   : > { %s2337_s10 = scalar_lea.vmem %s2668_s9, %s1441_s26  ;;  %1497 = vmatpush3.bf16.msra.mxu0 %v1736_v30  ;;  %s2672_s26 = sld [smem:[#allocation33_spill]]  ;;  %v756_v30 = vld [vmem:[#allocation8 + $0x38] sm:$0xff] }
  0x84   : > { %1509 = vmatpush3.bf16.msra.mxu1 %v1737_v31  ;;  %1498 = vmatprep.subr.bf16.mxu0 %v1738_v32  ;;  %v755_v31 = vld [vmem:[#allocation8 + $0x30] sm:$0xff] }
  0x85   : > { %1510 = vmatprep.subr.bf16.mxu1 %v1739_v33  ;;  %v1401_v50 = vld [vmem:[%s2669_s11] ss:$0 sm:$0xff] }
  0x86   : > { %v1402_v55 = vld [vmem:[%s2670_s25] ss:$0 sm:$0xff] }
  0x87   : > { %1499 = vmatpush3.bf16.msra.mxu0 %v1738_v32  ;;  %v754_v32 = vld [vmem:[#allocation8 + $0x28] sm:$0xff] }
  0x88   : > { %1511 = vmatpush3.bf16.msra.mxu1 %v1739_v33  ;;  %1500 = vmatprep.subr.bf16.mxu0 %v1740_v34  ;;  %v753_v33 = vld [vmem:[#allocation8 + $0x20] sm:$0xff]  ;;  %p1417_p13 = scmp.ne.s32.totalorder %s2673_s24, 0 }
  0x89   : > { %1512 = vmatprep.subr.bf16.mxu1 %v1741_v35 }
  0x8b   : > { %1501 = vmatpush3.bf16.msra.mxu0 %v1740_v34  ;;  %v752_v34 = vld [vmem:[#allocation8 + $0x18] sm:$0xff] }
  0x8c   : > { %1513 = vmatpush3.bf16.msra.mxu1 %v1741_v35  ;;  %1518 = vmatprep.subr.mxu0 %v764_v4  ;;  %v751_v35 = vld [vmem:[#allocation8 + $0x10] sm:$0xff] }
 0x106   : > { %v474_v8 = vpop.xlane.xlu0 %473  ;;  %v480_v9 = vpop.xlane.xlu1 %479 }
 0x107   : > { %v485_v10 = vmul.f32 0.015625, %v474_v8  ;;  %v487_v11 = vmul.f32 0.015625, %v480_v9  ;;  %v760_v8 = vld [vmem:[#allocation8 + $0x58] sm:$0xff]  ;;  %v1403_v9 = vld [vmem:[%s2671_s19] ss:$0 sm:$0xff] }
 0x109   : > { %v2315_v12 = vsub.f32 %v465_v0, %v485_v10  ;;  %v2317_v13 = vsub.f32 %v467_v1, %v487_v11 }
 0x10a   : > { %v477_v14 = vpop.xlane.xlu0 %476  ;;  %v483_v15 = vpop.xlane.xlu1 %482 }
 0x10b   : > { %v486_v16 = vmul.f32 0.015625, %v477_v14  ;;  %v488_v17 = vmul.f32 0.015625, %v483_v15  ;;  %v493_v18 = vmul.f32 %v2315_v12, %v2315_v12  ;;  %v495_v19 = vmul.f32 %v2317_v13, %v2317_v13 }
 0x10d   : > { %v490_v20 = vsub.f32 %v466_v2, %v486_v16  ;;  %v2323_v21 = vsub.f32 %v468_v5, %v488_v17  ;;  %v497_v22 = vsel %vm471_vm0, %v493_v18, 0.0  ;;  %v503_v23 = vsel %vm471_vm0, %v495_v19, 0.0  ;;  %v763_v5 = vld [vmem:[#allocation8 + $0x70] sm:$0xff] }
 0x10e   : > { %498 = vadd.xlane.f32.xlu0 %v497_v22 }
 0x10f   : > { %v494_v24 = vmul.f32 %v490_v20, %v490_v20  ;;  %v496_v25 = vmul.f32 %v2323_v21, %v2323_v21 }
 0x111   : > { %v500_v26 = vsel %vm471_vm0, %v494_v24, 0.0  ;;  %v506_v27 = vsel %vm471_vm0, %v496_v25, 0.0 }
 0x112   : > { %504 = vadd.xlane.f32.xlu0 %v503_v23  ;;  %501 = vadd.xlane.f32.xlu1 %v500_v26 }
 0x116   : > { %507 = vadd.xlane.f32.xlu1 %v506_v27  ;;  %v759_v27 = vld [vmem:[#allocation8 + $0x50] sm:$0xff] }
 0x197   : > { %v499_v36 = vpop.xlane.xlu0 %498 }
 0x198   : > { %v509_v37 = vmul.f32 0.015625, %v499_v36  ;;  %v750_v36 = vld [vmem:[#allocation8 + $0x8] sm:$0xff] }
 0x19a   : > { %v513_v38 = vadd.f32 1e-05, %v509_v37  ;;  %v749_v37 = vld [vmem:[#allocation8] sm:$0xff] }
 0x19b   : > { %v502_v39 = vpop.xlane.xlu1 %501  ;;  %v505_v40 = vpop.xlane.xlu0 %504 }
 0x19c   : > { %1742 = vrsqrt.f32 %v513_v38  ;;  %v510_v41 = vmul.f32 0.015625, %v502_v39  ;;  %v511_v42 = vmul.f32 0.015625, %v505_v40 }
 0x19e   : > { %v514_v43 = vadd.f32 1e-05, %v510_v41  ;;  %v515_v44 = vadd.f32 1e-05, %v511_v42 }
 0x19f   : > { %v508_v45 = vpop.xlane.xlu1 %507 }
 0x1a0   : > { %1744 = vrsqrt.f32 %v514_v43  ;;  %v512_v46 = vmul.f32 0.015625, %v508_v45 }
 0x1a1   : > { %1746 = vrsqrt.f32 %v515_v44 }
 0x1a2   : > { %v516_v47 = vadd.f32 1e-05, %v512_v46 }
 0x1a4   : > { %1748 = vrsqrt.f32 %v516_v47 }
 0x1a9   : > { %v1743_v48 = vpop.eup %1742 }
 0x1aa   : > { %v521_v49 = vmul.f32 %v1743_v48, %v2315_v12 }
 0x1ac   : > { %v531_v54 = vmul.f32 %v1401_v50, %v521_v49 }
 0x1ad   : > { %v1745_v51 = vpop.eup %1744 }
 0x1ae   : > { %v1747_v52 = vpop.eup %1746  ;;  %v522_v53 = vmul.f32 %v1745_v51, %v490_v20  ;;  %v541_v59 = vadd.f32 %v1402_v55, %v531_v54 }
 0x1af   : > { %v523_v56 = vmul.f32 %v1747_v52, %v2317_v13  ;;  %v1410_v13 = vld [vmem:[%s2672_s26] ss:$0 sm:$0xff] }
 0x1b0   : > { %v532_v57 = vmul.f32 %v1401_v50, %v522_v53 }
 0x1b1   : > { %v1749_v58 = vpop.eup %1748  ;;  %v533_v62 = vmul.f32 %v1401_v50, %v523_v56 }
 0x1b2   : > { %v542_v60 = vadd.f32 %v1402_v55, %v532_v57  ;;  %v524_v61 = vmul.f32 %v1749_v58, %v2323_v21 }
 0x1b3   : > { %v543_v1 = vadd.f32 %v1402_v55, %v533_v62 }
 0x1b4   : > { %v545_v63 = vpack.c.bf16 %v542_v60, %v541_v59  ;;  %v534_v0 = vmul.f32 %v1401_v50, %v524_v61 }
 0x1b6   : > { %1502 = vmatprep.mubr.msk.bf16.mxu0 %vm471_vm0, %v545_v63  ;;  %1514 = vmatprep.mubr.msk.bf16.mxu1 %vm471_vm0, %v545_v63  ;;  %v544_v2 = vadd.f32 %v1402_v55, %v534_v0 }
 0x1b8   : > { %v546_v3 = vpack.c.bf16 %v544_v2, %v543_v1 }
 0x1ba   : > { %1503 = vmatmul.mubr.msk.bf16.vlgmr.msra.gmra.mxu0 %vm471_vm0, %v546_v3  ;;  %1515 = vmatmul.mubr.msk.bf16.vlgmr.msra.gmra.mxu1 %vm471_vm0, %v546_v3 }
 0x1bb   : > { %1519 = vmatpush3.msra.mxu0 %v764_v4 }
 0x1bc   : > { %1520 = vmatprep.subr.mxu0 %v763_v5 }
 0x1bd   : > { %1521 = vmatpush3.msra.mxu0 %v763_v5 }
 0x1be   : > { %1522 = vmatprep.subr.mxu0 %v762_v6 }
 0x1bf   : > { %1523 = vmatpush3.msra.mxu0 %v762_v6 }
 0x1c0   : > { %1524 = vmatprep.subr.mxu0 %v761_v7 }
 0x1c1   : > { %1525 = vmatpush3.msra.mxu0 %v761_v7 }
 0x1c2   : > { %1526 = vmatprep.subr.mxu0 %v760_v8 }
 0x1c3   : > { %1527 = vmatpush3.msra.mxu0 %v760_v8 }
 0x1c4   : > { %1528 = vmatprep.subr.mxu0 %v759_v27 }
 0x1c5   : > { %1529 = vmatpush3.msra.mxu0 %v759_v27 }
 0x1c6   : > { %1530 = vmatprep.subr.mxu0 %v758_v28 }
 0x1c7   : > { %1531 = vmatpush3.msra.mxu0 %v758_v28 }
 0x1c8   : > { %1532 = vmatprep.subr.mxu0 %v757_v29 }
 0x1c9   : > { %1533 = vmatpush3.msra.mxu0 %v757_v29 }
 0x1ca   : > { %1534 = vmatprep.subr.mxu0 %v756_v30 }
 0x1cb   : > { %1535 = vmatpush3.msra.mxu0 %v756_v30 }
 0x1cc   : > { %1536 = vmatprep.subr.mxu0 %v755_v31 }
 0x1cd   : > { %1537 = vmatpush3.msra.mxu0 %v755_v31 }
 0x1ce   : > { %1538 = vmatprep.subr.mxu0 %v754_v32 }
 0x1cf   : > { %1539 = vmatpush3.msra.mxu0 %v754_v32 }
 0x1d0   : > { %1540 = vmatprep.subr.mxu0 %v753_v33 }
 0x1d1   : > { %1541 = vmatpush3.msra.mxu0 %v753_v33 }
 0x1d2   : > { %1542 = vmatprep.subr.mxu0 %v752_v34 }
 0x1d3   : > { %1543 = vmatpush3.msra.mxu0 %v752_v34 }
 0x1d4   : > { %1544 = vmatprep.subr.mxu0 %v751_v35 }
 0x1d5   : > { %1545 = vmatpush3.msra.mxu0 %v751_v35 }
 0x1d6   : > { %1546 = vmatprep.subr.mxu0 %v750_v36 }
 0x1d7   : > { %1547 = vmatpush3.msra.mxu0 %v750_v36 }
 0x1d8   : > { %1548 = vmatprep.subr.mxu0 %v749_v37 }
 0x1d9   : > { %1549 = vmatpush3.msra.mxu0 %v749_v37 }
 0x27a   : > { %v1504_v10 = vpop.f32.mrf.mxu0  ;;  %v1516_v11 = vpop.f32.mrf.mxu1 }
 0x27b   : > { %v2355_v12 = vadd.f32 %v1504_v10, %v1403_v9  ;;  %v723_v23 = vadd.f32 %v1516_v11, %v1410_v13 }
 0x27c   : > { %v626_v14 = vpop.f32.mrf.mxu0  ;;  %v714_v15 = vpop.f32.mrf.mxu1 }
 0x27d   : > { %v2360_v16 = vadd.f32 %v1403_v9, %v626_v14  ;;  %v715_v17 = vadd.f32 %v1410_v13, %v714_v15 }
 0x27e   : > { %v1505_v18 = vpop.f32.mrf.mxu0  ;;  %v1517_v19 = vpop.f32.mrf.mxu1 }
 0x27f   : > { %v2362_v20 = vadd.f32 %v1505_v18, %v1403_v9  ;;  %729 = vmax.xlane.f32.xlu0 %v715_v17  ;;  %v726_v26 = vadd.f32 %v1517_v19, %v1410_v13 }
 0x280   : > { %v629_v21 = vpop.f32.mrf.mxu0  ;;  %v717_v22 = vpop.f32.mrf.mxu1 }
 0x281   : > { %v2364_v24 = vadd.f32 %v1403_v9, %v629_v21  ;;  %v718_v25 = vadd.f32 %v1410_v13, %v717_v22 }
 0x283   : > { %731 = vmax.xlane.f32.xlu1 %v718_v25  ;;  %733 = vmax.xlane.f32.xlu0 %v723_v23 }
 0x287   : > { %735 = vmax.xlane.f32.xlu1 %v726_v26 }
 0x308   : > { %v730_v38 = vpop.xlane.xlu0 %729 }
 0x309   : > { %v737_v39 = vsub.f32 %v715_v17, %v730_v38 }
 0x30b   : > { %v741_v40 = vmul.f32 1.442695, %v737_v39 }
 0x30c   : > { %v732_v41 = vpop.xlane.xlu1 %731  ;;  %v734_v42 = vpop.xlane.xlu0 %733 }
 0x30d   : > { %1750 = vpow2.f32 %v741_v40  ;;  %v738_v43 = vsub.f32 %v718_v25, %v732_v41  ;;  %v739_v44 = vsub.f32 %v723_v23, %v734_v42 }
 0x30f   : > { %v743_v45 = vmul.f32 1.442695, %v738_v43  ;;  %v745_v46 = vmul.f32 1.442695, %v739_v44 }
 0x310   : > { %v736_v47 = vpop.xlane.xlu1 %735 }
 0x311   : > { %1752 = vpow2.f32 %v743_v45  ;;  %v740_v48 = vsub.f32 %v726_v26, %v736_v47 }
 0x312   : > { %1754 = vpow2.f32 %v745_v46 }
 0x313   : > { %v747_v49 = vmul.f32 1.442695, %v740_v48 }
 0x315   : > { %1756 = vpow2.f32 %v747_v49 }
 0x31a   : > { %v1751_v50 = vpop.eup %1750 }
 0x31b   : > { %1550 = vmatprep.mubr.f32.mxu0 %v1751_v50 }
 0x31e   : > { %v1753_v51 = vpop.eup %1752 }
 0x31f   : > { %v1755_v52 = vpop.eup %1754  ;;  %1551 = vmatmul.mubr.f32.vlgmr.msra.gmra.mxu0 %v1753_v51 }
 0x320   : > { %1553 = vmatprep.mubr.f32.mxu0 %v1755_v52 }
 0x322   : > { %v1757_v53 = vpop.eup %1756 }
 0x323   : > { %1554 = vmatmul.mubr.f32.gmra.mxu0 %v1757_v53 }
 0x3df   : > { %v1552_v54 = vpop.f32.mrf.mxu0 }
 0x3e0   : > { %1758 = vrcp.f32 %v1552_v54 }
 0x3e1   : > { %v831_v55 = vpop.f32.mrf.mxu0 }
 0x3e2   : > { %1760 = vrcp.f32 %v831_v55 }
 0x3e3   : > { %v1555_v56 = vpop.f32.mrf.mxu0 }
 0x3e4   : > { %1762 = vrcp.f32 %v1555_v56 }
 0x3e5   : > { %v841_v57 = vpop.f32.mrf.mxu0 }
 0x3e6   : > { %1764 = vrcp.f32 %v841_v57 }
 0x3ed   : > { %v1759_v58 = vpop.eup %1758 }
 0x3ee   : > { %v2366_v59 = vmul.f32 %v1759_v58, %v1753_v51 }
 0x3ef   : > { %v1761_v60 = vpop.eup %1760 }
 0x3f0   : > { %859 = vst [vmem:[%s2370_s28 + $0x8] sm:$0xff] %v2366_v59  ;;  %v2374_v61 = vmul.f32 %v1761_v60, %v1751_v50 }
 0x3f1   : > { %v1763_v62 = vpop.eup %1762 }
 0x3f2   : > { %858 = vst [vmem:[%s2370_s28] sm:$0xff] %v2374_v61  ;;  %v2378_v63 = vmul.f32 %v1763_v62, %v1757_v53  ;;  %865 = sbr.rel (%p1417_p13) target bundleno = 1025 (0x401), region = 72 }
 0x3f3   : > { %v1765_v0 = vpop.eup %1764 }
 0x3f4   : > { %861 = vst [vmem:[%s2370_s28 + $0x18] sm:$0xff] %v2378_v63  ;;  %v2382_v1 = vmul.f32 %v1765_v0, %v1755_v52 }
 0x3f6   : > { %860 = vst [vmem:[%s2370_s28 + $0x10] sm:$0xff] %v2382_v1 }
 0x3f7   : > { %v2040_v2 = vmov 0.0  }
 0x3f8   : > { %866 = vst.msk [vmem:[%s2337_s10] sm:$0xff] %vm471_vm0, %v2040_v2  ;;  %867 = vst.msk [vmem:[%s2337_s10 + $0x8] sm:$0xff] %vm471_vm0, %v2040_v2 }
 0x3f9   : > { %868 = vst.msk [vmem:[%s2337_s10 + $0x10] sm:$0xff] %vm471_vm0, %v2040_v2  ;;  %869 = vst.msk [vmem:[%s2337_s10 + $0x18] sm:$0xff] %vm471_vm0, %v2040_v2 }
 0x3fa   : > { %870 = vst.msk [vmem:[%s2337_s10 + $0x20] sm:$0xff] %vm471_vm0, %v2040_v2  ;;  %871 = vst.msk [vmem:[%s2337_s10 + $0x28] sm:$0xff] %vm471_vm0, %v2040_v2 }
 0x3fb   : > { %872 = vst.msk [vmem:[%s2337_s10 + $0x30] sm:$0xff] %vm471_vm0, %v2040_v2  ;;  %873 = vst.msk [vmem:[%s2337_s10 + $0x38] sm:$0xff] %vm471_vm0, %v2040_v2 }
 0x3fc   : > { %874 = vst.msk [vmem:[%s2337_s10 + $0x40] sm:$0xff] %vm471_vm0, %v2040_v2  ;;  %875 = vst.msk [vmem:[%s2337_s10 + $0x48] sm:$0xff] %vm471_vm0, %v2040_v2 }
 0x3fd   : > { %876 = vst.msk [vmem:[%s2337_s10 + $0x50] sm:$0xff] %vm471_vm0, %v2040_v2  ;;  %877 = vst.msk [vmem:[%s2337_s10 + $0x58] sm:$0xff] %vm471_vm0, %v2040_v2 }
 0x3fe   : > { %878 = vst.msk [vmem:[%s2337_s10 + $0x60] sm:$0xff] %vm471_vm0, %v2040_v2  ;;  %879 = vst.msk [vmem:[%s2337_s10 + $0x68] sm:$0xff] %vm471_vm0, %v2040_v2 }
 0x3ff   : > { %880 = vst.msk [vmem:[%s2337_s10 + $0x70] sm:$0xff] %vm471_vm0, %v2040_v2  ;;  %881 = vst.msk [vmem:[%s2337_s10 + $0x78] sm:$0xff] %vm471_vm0, %v2040_v2 }
 0x400   : > { %882 = vst [vmem:[%s2388_s16] sm:$0x1] %v2040_v2 }
 0x401 PF: > { %899 = vxpose.xlu0.b32.start [1/4] (short) %v2374_v61, 128  ;;  %1556 = vmatprep.subr.mxu1 %v2362_v20  ;;  %vm931_vm1 = vcmask 261120   ;;  %s2674_s5 = sld [smem:[#allocation20_spill]]  ;;  %v1158_v19 = vadd.f32 %v2366_v59, %v2374_v61  ;;  %s1436_s3 = sshll.u32 %s2018_s20, 3 }
 0x402   : > { %1557 = vmatpush3.msra.mxu1 %v2362_v20  ;;  %s1194_s30 = sshll.u32 %s2370_s28, 4  ;;  %s2676_s8 = sld [smem:[#allocation35_spill]]  ;;  %s2466_s30 = int_to_ptr.vmem [resolvable:$true] %s1194_s30 }
 0x403   : > { %1558 = vmatprep.subr.mxu1 %v2355_v12  ;;  %v1159_v20 = vadd.f32 %v1158_v19, %v2382_v1  ;;  %s1170_s26 = scalar_lea.sflag [#allocation4], %s2293_s29  ;;  %s1872_s24 = scalar_lea.vmem %s2466_s30, 512 }
 0x404   : > { %1559 = vmatpush3.msra.mxu1 %v2355_v12  ;;  %p1873_p2 = scmp.ne.s32.totalorder %s2466_s30, %s1872_s24 }
 0x405   : > { %900 = vxpose.xlu0.b32.cont [2/4] (short) %v2366_v59, 128  ;;  %1560 = vmatprep.subr.mxu1 %v2364_v24  ;;  %v1160_v21 = vadd.f32 %v1159_v20, %v2378_v63 }
 0x406   : > { %1561 = vmatpush3.msra.mxu1 %v2364_v24  ;;  %p1874_p1 = pnand %p1873_p2, %p2252_p8 }
 0x407   : > { %1562 = vmatprep.subr.mxu1 %v2360_v16  ;;  %v1161_v22 = vrot.slane %v1160_v21, 4  ;;  %s1435_s11 = sshll.u32 %s2674_s5, 2  ;;  %v1157_v28 = vld [vmem:[%s2388_s16] sm:$0x1]  ;;  %s2041_s5 = smov [#allocation10]  }
 0x408   : > { %1563 = vmatpush3.msra.mxu1 %v2360_v16  ;;  %s1191_s4 = sadd.s32 %s1436_s3, %s1435_s11  ;;  %p1875_p4 = pneg %p1874_p1 }
 0x409   : > { %901 = vxpose.xlu0.b32.cont [3/4] (short) %v2382_v1, 128  ;;  %v1162_v23 = vadd.f32 %v1161_v22, %v1160_v21  ;;  %s1437_s25 = sshll.u32 %s1191_s4, 7  ;;  %s1876_s11 = sshll.u32 %s2041_s5, 4  ;;  %s1877_s11 = int_to_ptr.vmem [resolvable:$false] %s1876_s11 }
 0x40a   : > { %s2463_s6 = scalar_lea.hbm %s2676_s8, %s1437_s25  ;;  %s1878_s28 = scalar_lea.vmem %s1877_s11, 1024 }
 0x40b   : > { %v1163_v24 = vrot.slane %v1162_v23, 2  ;;  %p1879_p6 = scmp.lt.s32.totalorder %s2466_s30, %s1877_s11  ;;  %p1880_p3 = scmp.lt.s32.totalorder %s1878_s28, %s1872_s24 }
 0x40d   : > { %902 = vxpose.xlu0.b32.end [4/4] (short) %v2378_v63, 128  ;;  %v1164_v25 = vadd.f32 %v1163_v24, %v1162_v23  ;;  %p1881_p7 = por %p1880_p3, %p1879_p6 }
 0x40f   : > { %v1165_v26 = vrot.slane %v1164_v25, 1  ;;  %p1882_p11 = pnand %p1881_p7, %p1875_p4 }
 0x411   : > { %v1166_v27 = vadd.f32 %v1165_v26, %v1164_v25 }
 0x413   : > { %v1167_v29 = vadd.f32 %v1166_v27, %v1157_v28 }
 0x415   : > { %1168 = vst [vmem:[%s2388_s16] sm:$0x1] %v1167_v29 }
 0x47d   : > { %v915_v3 = vpop.trf.xlu0 }
 0x47e   : > { %1564 = vmatprep.mubr.msk.f32.mxu1 %vm931_vm1, %v915_v3 }
 0x481   : > { %v916_v4 = vpop.trf.xlu0 }
 0x482   : > { %1565 = vmatmul.mubr.msk.f32.vlgmr.msra.gmra.mxu1 %vm931_vm1, %v916_v4 }
 0x485   : > { %v917_v5 = vpop.trf.xlu0 }
 0x486   : > { %1567 = vmatprep.mubr.msk.f32.mxu1 %vm931_vm1, %v917_v5 }
 0x489   : > { %v918_v6 = vpop.trf.xlu0 }
 0x48a   : > { %1568 = vmatmul.mubr.msk.f32.gmra.mxu1 %vm931_vm1, %v918_v6 }
 0x48d   : > { %v919_v7 = vpop.trf.xlu0 }
 0x48e   : > { %1570 = vmatprep.mubr.msk.f32.mxu1 %vm931_vm1, %v919_v7 }
 0x491   : > { %v920_v8 = vpop.trf.xlu0 }
 0x492   : > { %1571 = vmatmul.mubr.msk.f32.gmra.mxu1 %vm931_vm1, %v920_v8 }
 0x495   : > { %v921_v9 = vpop.trf.xlu0 }
 0x496   : > { %1573 = vmatprep.mubr.msk.f32.mxu1 %vm931_vm1, %v921_v9 }
 0x499   : > { %v922_v10 = vpop.trf.xlu0 }
 0x49a   : > { %1574 = vmatmul.mubr.msk.f32.gmra.mxu1 %vm931_vm1, %v922_v10 }
 0x49d   : > { %v923_v11 = vpop.trf.xlu0 }
 0x49e   : > { %1576 = vmatprep.mubr.msk.f32.mxu1 %vm931_vm1, %v923_v11 }
 0x4a1   : > { %v924_v12 = vpop.trf.xlu0 }
 0x4a2   : > { %1577 = vmatmul.mubr.msk.f32.gmra.mxu1 %vm931_vm1, %v924_v12 }
 0x4a5   : > { %v925_v13 = vpop.trf.xlu0 }
 0x4a6   : > { %1579 = vmatprep.mubr.msk.f32.mxu1 %vm931_vm1, %v925_v13 }
 0x4a9   : > { %v926_v14 = vpop.trf.xlu0 }
 0x4aa   : > { %1580 = vmatmul.mubr.msk.f32.gmra.mxu1 %vm931_vm1, %v926_v14 }
 0x4ad   : > { %v927_v15 = vpop.trf.xlu0 }
 0x4ae   : > { %1582 = vmatprep.mubr.msk.f32.mxu1 %vm931_vm1, %v927_v15 }
 0x4b1   : > { %v928_v16 = vpop.trf.xlu0 }
 0x4b2   : > { %1583 = vmatmul.mubr.msk.f32.gmra.mxu1 %vm931_vm1, %v928_v16 }
 0x4b5   : > { %v929_v17 = vpop.trf.xlu0 }
 0x4b6   : > { %1585 = vmatprep.mubr.msk.f32.mxu1 %vm931_vm1, %v929_v17 }
 0x4b9   : > { %v930_v18 = vpop.trf.xlu0 }
 0x4ba   : > { %1586 = vmatmul.mubr.msk.f32.gmra.mxu1 %vm931_vm1, %v930_v18 }
 0x4bb   : > { %1885 = shalt.err (!%p1882_p11)
}
 0x4bc   : > { %s1886_s3 = scalar_lea.hbm %s2463_s6, 512  ;;  %s1890_s2 = scalar_lea.hbm %s2676_s8, 2048 }
 0x4bd   : > { %p1887_p5 = scmp.ne.s32.totalorder %s2463_s6, %s1886_s3  ;;  %p1891_p10 = scmp.lt.s32.totalorder %s2463_s6, %s2676_s8 }
 0x4be   : > { %p1892_p12 = scmp.lt.s32.totalorder %s1890_s2, %s1886_s3 }
 0x4bf   : > { %p1888_p0 = pnand %p1887_p5, %p2252_p8 }
 0x4c0   : > { %p1893_p13 = por %p1892_p12, %p1891_p10 }
 0x4c1   : > { %p1889_p9 = pneg %p1888_p0 }
 0x4c3   : > { %p1894_p2 = pnand %p1893_p13, %p1889_p9 }
 0x4c5   : > { %1897 = shalt.err (!%p1894_p2)
}
 0x4c6   : > { %s2042_s24 = smov 128   ;;  %s2677_s11 = sld [smem:[#allocation22_spill]] }
 0x4c7   : > { %s2043_s28 = smov 8   ;;  %s1438_s4 = sshll.u32 %s2018_s20, 4 }
 0x4c8   : > { %1602 = dma.vmem_to_hbm [thread:$0]  (%p2252_p8), %s2466_s30, 512, %s2463_s6, %s1170_s26, %s2042_s24, %s2042_s24, %s2043_s28  }
 0x4c9   : > { %s1213_s25 = sshll.u32 %s2388_s16, 4  ;;  %s2678_s2 = sld [smem:[#allocation37_spill]]  ;;  %s1214_s25 = int_to_ptr.vmem [resolvable:$true] %s1213_s25 }
 0x4ca   : > { %s1180_s0 = scalar_lea.sflag [#allocation12], %s455_s1  ;;  %s1898_s8 = scalar_lea.vmem %s1214_s25, 16 }
 0x4cb   : > { %p1899_p1 = scmp.ne.s32.totalorder %s1214_s25, %s1898_s8  ;;  %s2044_s9 = smov [#allocation11]  }
 0x4cc   : > { %p2679_p4 = scmp.ne.s32.totalorder %s2677_s11, 0  ;;  %s1902_s12 = sshll.u32 %s2044_s9, 4  ;;  %s1903_s12 = int_to_ptr.vmem [resolvable:$false] %s1902_s12 }
 0x4cd   : > { %s1904_s13 = scalar_lea.vmem %s1903_s12, 32  ;;  %p1905_p7 = scmp.lt.s32.totalorder %s1214_s25, %s1903_s12 }
 0x4ce   : > { %p1900_p6 = pnand %p1899_p1, %p2679_p4  ;;  %p1906_p8 = scmp.lt.s32.totalorder %s1904_s13, %s1898_s8 }
 0x4cf   : > { %s1211_s5 = scalar_lea.hbm %s2678_s2, %s1438_s4 }
 0x4d0   : > { %p1901_p3 = pneg %p1900_p6  ;;  %p1907_p11 = por %p1906_p8, %p1905_p7 }
 0x4d2   : > { %p1908_p5 = pnand %p1907_p11, %p1901_p3 }
 0x4d4   : > { %1911 = shalt.err (!%p1908_p5)
}
 0x4d5   : > { %s1912_s20 = scalar_lea.hbm %s1211_s5, 16  ;;  %s1916_s16 = scalar_lea.hbm %s2678_s2, 32 }
 0x4d6   : > { %p1913_p0 = scmp.ne.s32.totalorder %s1211_s5, %s1912_s20  ;;  %p1917_p12 = scmp.lt.s32.totalorder %s1211_s5, %s2678_s2 }
 0x4d7   : > { %p1918_p13 = scmp.lt.s32.totalorder %s1916_s16, %s1912_s20 }
 0x4d8   : > { %p1914_p9 = pnand %p1913_p0, %p2679_p4 }
 0x4d9   : > { %p1919_p2 = por %p1918_p13, %p1917_p12 }
 0x4da   : > { %p1915_p10 = pneg %p1914_p9 }
 0x4dc   : > { %p1920_p1 = pnand %p1919_p2, %p1915_p10 }
 0x4de   : > { %1923 = shalt.err (!%p1920_p1)
}
 0x4df   : > { %1603 = dma.vmem_to_hbm [thread:$0]  (%p2679_p4), %s1214_s25, 16, %s1211_s5, %s1180_s0   ;;  %v884_v30 = vld [vmem:[%s2337_s10 + $0x8] sm:$0xff]  ;;  %v883_v32 = vld [vmem:[%s2337_s10] sm:$0xff]  ;;  %v886_v36 = vld [vmem:[%s2337_s10 + $0x18] sm:$0xff] }
 0x4e0   : > { %v885_v38 = vld [vmem:[%s2337_s10 + $0x10] sm:$0xff]  ;;  %v888_v42 = vld [vmem:[%s2337_s10 + $0x28] sm:$0xff]  ;;  %v887_v44 = vld [vmem:[%s2337_s10 + $0x20] sm:$0xff] }
 0x4e1   : > { %v890_v48 = vld [vmem:[%s2337_s10 + $0x38] sm:$0xff]  ;;  %v889_v50 = vld [vmem:[%s2337_s10 + $0x30] sm:$0xff]  ;;  %v892_v54 = vld [vmem:[%s2337_s10 + $0x48] sm:$0xff] }
 0x4e2   : > { %v891_v56 = vld [vmem:[%s2337_s10 + $0x40] sm:$0xff]  ;;  %v894_v60 = vld [vmem:[%s2337_s10 + $0x58] sm:$0xff]  ;;  %v893_v62 = vld [vmem:[%s2337_s10 + $0x50] sm:$0xff] }
 0x4e3   : > { %v896_v2 = vld [vmem:[%s2337_s10 + $0x68] sm:$0xff]  ;;  %v895_v4 = vld [vmem:[%s2337_s10 + $0x60] sm:$0xff]  ;;  %v898_v8 = vld [vmem:[%s2337_s10 + $0x78] sm:$0xff] }
 0x4e4   : > { %v897_v10 = vld [vmem:[%s2337_s10 + $0x70] sm:$0xff] }
 0x542   : > { %v1566_v31 = vpop.f32.mrf.mxu1 }
 0x543   : > { %v1126_v33 = vadd.f32 %v1566_v31, %v884_v30 }
 0x544   : > { %v1046_v34 = vpop.f32.mrf.mxu1 }
 0x545   : > { %1142 = vst.msk [vmem:[%s2337_s10 + $0x8] sm:$0xff] %vm471_vm0, %v1126_v33  ;;  %v1125_v35 = vadd.f32 %v1046_v34, %v883_v32 }
 0x547   : > { %1141 = vst.msk [vmem:[%s2337_s10] sm:$0xff] %vm471_vm0, %v1125_v35 }
 0x54a   : > { %v1569_v37 = vpop.f32.mrf.mxu1 }
 0x54b   : > { %v1128_v39 = vadd.f32 %v1569_v37, %v886_v36 }
 0x54c   : > { %v1056_v40 = vpop.f32.mrf.mxu1 }
 0x54d   : > { %1144 = vst.msk [vmem:[%s2337_s10 + $0x18] sm:$0xff] %vm471_vm0, %v1128_v39  ;;  %v1127_v41 = vadd.f32 %v1056_v40, %v885_v38 }
 0x54f   : > { %1143 = vst.msk [vmem:[%s2337_s10 + $0x10] sm:$0xff] %vm471_vm0, %v1127_v41 }
 0x552   : > { %v1572_v43 = vpop.f32.mrf.mxu1 }
 0x553   : > { %v1130_v45 = vadd.f32 %v1572_v43, %v888_v42 }
 0x554   : > { %v1066_v46 = vpop.f32.mrf.mxu1 }
 0x555   : > { %1146 = vst.msk [vmem:[%s2337_s10 + $0x28] sm:$0xff] %vm471_vm0, %v1130_v45  ;;  %v1129_v47 = vadd.f32 %v1066_v46, %v887_v44 }
 0x557   : > { %1145 = vst.msk [vmem:[%s2337_s10 + $0x20] sm:$0xff] %vm471_vm0, %v1129_v47 }
 0x55a   : > { %v1575_v49 = vpop.f32.mrf.mxu1 }
 0x55b   : > { %v1132_v51 = vadd.f32 %v1575_v49, %v890_v48 }
 0x55c   : > { %v1076_v52 = vpop.f32.mrf.mxu1 }
 0x55d   : > { %1148 = vst.msk [vmem:[%s2337_s10 + $0x38] sm:$0xff] %vm471_vm0, %v1132_v51  ;;  %v1131_v53 = vadd.f32 %v1076_v52, %v889_v50 }
 0x55f   : > { %1147 = vst.msk [vmem:[%s2337_s10 + $0x30] sm:$0xff] %vm471_vm0, %v1131_v53 }
 0x562   : > { %v1578_v55 = vpop.f32.mrf.mxu1 }
 0x563   : > { %v1134_v57 = vadd.f32 %v1578_v55, %v892_v54 }
 0x564   : > { %v1086_v58 = vpop.f32.mrf.mxu1 }
 0x565   : > { %1150 = vst.msk [vmem:[%s2337_s10 + $0x48] sm:$0xff] %vm471_vm0, %v1134_v57  ;;  %v1133_v59 = vadd.f32 %v1086_v58, %v891_v56 }
 0x567   : > { %1149 = vst.msk [vmem:[%s2337_s10 + $0x40] sm:$0xff] %vm471_vm0, %v1133_v59 }
 0x56a   : > { %v1581_v61 = vpop.f32.mrf.mxu1 }
 0x56b   : > { %v1136_v63 = vadd.f32 %v1581_v61, %v894_v60 }
 0x56c   : > { %v1096_v0 = vpop.f32.mrf.mxu1 }
 0x56d   : > { %1152 = vst.msk [vmem:[%s2337_s10 + $0x58] sm:$0xff] %vm471_vm0, %v1136_v63  ;;  %v1135_v1 = vadd.f32 %v1096_v0, %v893_v62 }
 0x56f   : > { %1151 = vst.msk [vmem:[%s2337_s10 + $0x50] sm:$0xff] %vm471_vm0, %v1135_v1 }
 0x572   : > { %v1584_v3 = vpop.f32.mrf.mxu1 }
 0x573   : > { %v1138_v5 = vadd.f32 %v1584_v3, %v896_v2 }
 0x574   : > { %v1106_v6 = vpop.f32.mrf.mxu1 }
 0x575   : > { %1154 = vst.msk [vmem:[%s2337_s10 + $0x68] sm:$0xff] %vm471_vm0, %v1138_v5  ;;  %v1137_v7 = vadd.f32 %v1106_v6, %v895_v4 }
 0x577   : > { %1153 = vst.msk [vmem:[%s2337_s10 + $0x60] sm:$0xff] %vm471_vm0, %v1137_v7 }
 0x57a   : > { %v1587_v9 = vpop.f32.mrf.mxu1 }
 0x57b   : > { %v1140_v11 = vadd.f32 %v1587_v9, %v898_v8 }
 0x57c   : > { %v1116_v12 = vpop.f32.mrf.mxu1 }
 0x57d   : > { %1156 = vst.msk [vmem:[%s2337_s10 + $0x78] sm:$0xff] %vm471_vm0, %v1140_v11  ;;  %v1139_v13 = vadd.f32 %v1116_v12, %v897_v10 }
 0x57f   : > { %1155 = vst.msk [vmem:[%s2337_s10 + $0x70] sm:$0xff] %vm471_vm0, %v1139_v13 }
 0x580 PF: > { %s2680_s0 = sld [smem:[#allocation19_spill]]  ;;  %p1634_p4 = scmp.ge.s32.totalorder %s2030_s23, 2 }
 0x581   : > { %s2681_s9 = sld [smem:[#allocation21_spill]] }
 0x586   : > { %s1225_s12 = sand.u32 1, %s2680_s0  }
 0x587   : > { %p2682_p6 = scmp.ne.s32.totalorder %s2681_s9, 0  ;;  %s1226_s8 = scalar_lea.sflag [#allocation4], %s1225_s12 }
 0x589   : > { %p1621_p3 = pnand %p1634_p4, %p2682_p6 }
 0x58b   : > { %p1622_p7 = pneg %p1621_p3 }
 0x58d   : > { %1981 = dma.done.wait (%p1622_p7), %s1226_s8, 512  }
 0x58e   : > { %1983 = vsyncadd (%p1622_p7), %s1226_s8, 4294966784  ;;  %s2683_s26 = sld [smem:[#allocation18_spill]] }
 0x58f   : > { %s2684_s24 = sld [smem:[#allocation23_spill]] }
 0x594   : > { %s1242_s11 = sand.u32 1, %s2683_s26  }
 0x595   : > { %p2685_p8 = scmp.ne.s32.totalorder %s2684_s24, 0  ;;  %s1243_s28 = scalar_lea.sflag [#allocation12], %s1242_s11 }
 0x597   : > { %p1624_p11 = pnand %p1634_p4, %p2685_p8 }
 0x599   : > { %p1625_p5 = pneg %p1624_p11 }
 0x59b   : > { %1985 = dma.done.wait (%p1625_p5), %s1243_s28, 16  }
 0x59c   : > { %1987 = vsyncadd (%p1625_p5), %s1243_s28, 4294967280  ;;  %s32_s23 = sadd.s32 1, %s2030_s23   ;;  %s2686_s10 = sld [smem:[#allocation24_spill]] }
 0x59d   : > { %p29_p0 = scmp.ge.s32.totalorder %s32_s23, 6   ;;  %s2687_s4 = sld [smem:[#allocation26_spill]] }
 0x59e   : > { %s2688_s13 = smov %s1994_s14  ;;  %s2689_s14 = smov %s1998_s15 }
 0x59f   : > { %s2690_s15 = smov %s2266_s7  ;;  %s2691_s16 = smov %s2006_s17 }
 0x5a0   : > { %s2692_s17 = smov %s2010_s18  ;;  %s2693_s18 = smov %s2269_s27 }
 0x5a1   : > { %s2694_s19 = smov %s2022_s21  ;;  %s2695_s20 = smov %s2026_s22 }
 0x5a2   : > { %s2696_s21 = smov %s2686_s10  ;;  %31 = sbr.rel (!%p29_p0) target bundleno = 25 (0x19), region = 142 }
 0x5a3   : > { %s2697_s22 = smov %s2687_s4 }
 0x5a7   :  { %1247 = vsyncpa [#allocation3], 1 }
 0x5a8   :  { %1249 = vsyncpa [#allocation3 + $0x1], 1 }
 0x5a9   :  { %1250 = vsyncpa [#allocation6], 1 }
 0x5aa   :  { %1251 = vsyncpa [#allocation9], 1 }
 0x5ab   :  { %1252 = vsyncpa [#allocation4], 1 }
 0x5ac   :  { %1254 = vsyncpa [#allocation4 + $0x1], 1 }
 0x5ad   :  { %1255 = vsyncpa [#allocation12], 1 }
 0x5ae   :  { %1257 = vsyncpa [#allocation12 + $0x1], 1 }

</bundles_post_ra>
